<compile_context>
chip_gen: v7x
topology: tpu7x:2x2x1
jax: 0.10.0
libtpu: 0.0.40
codegen_flags: <defaults>
</compile_context>

<pallas_src>
import functools

import jax
import jax.numpy as jnp
from jax.experimental import pallas as pl
from jax.experimental.pallas import tpu as pltpu

BN_EPS = 1e-5
LN_EPS = 1e-5


def _round_up(a, b):
    return (a + b - 1) // b * b


def _vmem_limit(nbytes):
    # Headroom for compiler temporaries; this is a cap, not a reservation.
    return int(min(2 * nbytes + (8 << 20), 112 << 20))


# --------- pass 1: h_cat = x @ [W1|Ws] + b  (bf16 out) + global BN statistics ---------
def hcat_stats_kernel(x_ref, wcat_ref, bcat_ref, stats_ref, hcat_ref, *,
                      n_real, n_pad, tile_rows, tiles_per_shard, proj_pad):
    c = pl.program_id(0)          # stats shard (parallel; 2 TCs on v7x)
    i = pl.program_id(1)          # batch tile within shard (arbitrary / reduction)

    @pl.when(i == 0)
    def _():
        stats_ref[...] = jnp.zeros_like(stats_ref)

    # x / w_cat are already bf16 (cast once in the wrapper); f32 accumulation.
    h_cat = jnp.dot(x_ref[...], wcat_ref[...],
                    preferred_element_type=jnp.float32) + bcat_ref[...]
    hcat_ref[...] = h_cat.astype(hcat_ref.dtype)

    h1 = h_cat[:, :proj_pad]      # W1 half feeds the BatchNorm statistics

    def accum(v):
        # Two row-slice accumulates (no sublane concatenate through the XLU).
        stats_ref[0:1, :] += jnp.sum(v, axis=0, keepdims=True)
        stats_ref[1:2, :] += jnp.sum(v * v, axis=0, keepdims=True)

    if n_real == n_pad:           # static: no padded batch rows at all
        accum(h1)
    else:
        start = (c * tiles_per_shard + i) * tile_rows
        is_full = start + tile_rows <= n_real

        @pl.when(is_full)         # fully-real tiles skip the mask entirely
        def _():
            accum(h1)

        @pl.when(jnp.logical_not(is_full))
        def _():
            row = start + jax.lax.broadcasted_iota(jnp.int32, h1.shape, 0)
            accum(jnp.where(row < n_real, h1, 0.0))


# ------------- pass 2: BN(scale/shift) -> ReLU -> Linear2 -> +shortcut -> LN -------------
def mi_apply_kernel(scale_ref, shift_ref, hcat_ref, w2_ref, b2_ref,
                    ln_g_ref, ln_b_ref, o_ref, *, proj_dim, proj_pad):
    h_cat = hcat_ref[...]
    h1 = h_cat[:, :proj_pad].astype(jnp.float32)
    sc = h_cat[:, proj_pad:].astype(jnp.float32)

    # BatchNorm folded to per-feature scale/shift in the wrapper; ReLU.
    h1 = jnp.maximum(h1 * scale_ref[...] + shift_ref[...], 0.0)

    # Linear2 on the MXU (bf16 operands, f32 accumulation) + shortcut residual.
    h = jnp.dot(h1.astype(w2_ref.dtype), w2_ref[...],
                preferred_element_type=jnp.float32) + b2_ref[...] + sc

    # LayerNorm over the REAL proj_dim columns.  Padded columns of h are exactly
    # zero (zero-padded weights/biases), so no column mask is needed; variance
    # uses the one-pass formula with a >=0 clamp.
    inv_p = 1.0 / float(proj_dim)
    mu = jnp.sum(h, axis=-1, keepdims=True) * inv_p
    v = jnp.maximum(jnp.sum(h * h, axis=-1, keepdims=True) * inv_p - mu * mu, 0.0)
    out = (h - mu) * jax.lax.rsqrt(v + LN_EPS) * ln_g_ref[...] + ln_b_ref[...]
    o_ref[...] = out.astype(o_ref.dtype)


# ---------------------------------------- wrapper ----------------------------------------
def mi_projection(x, params, *, tile_rows=256, stat_shards=2):
    """x: (N, inp_dim) float32. params: dict of (out_dim-last) transposed weights.

    tile_rows: batch rows per grid step (v5e: consider 512; v7x: keep ~256 to fit
    64 MiB VMEM).  stat_shards: leading parallel axis of pass 1 (2 -> both v7x TCs).
    """
    n, inp_dim = x.shape
    proj_dim = params["w1_t"].shape[1]

    # Lane-dense feature dims (multiples of 128), sublane-aligned row tile (x8).
    inp_pad = _round_up(inp_dim, 128)
    proj_pad = _round_up(proj_dim, 128)
    tile = _round_up(min(tile_rows, _round_up(n, 8)), 8)
    n_pad = _round_up(n, stat_shards * tile)
    n_tiles = n_pad // tile
    tiles_per_shard = n_tiles // stat_shards

    f32, bf16 = jnp.float32, jnp.bfloat16

    def pad2(a, r, c, dtype=f32):
        a = a.astype(f32)
        a = jnp.pad(a, ((0, r - a.shape[0]), (0, c - a.shape[1])))
        return a.astype(dtype)

    # bf16 MXU operands cast once here (halves HBM traffic and resident VMEM).
    xp = pad2(x, n_pad, inp_pad, bf16)
    w_cat = jnp.concatenate([pad2(params["w1_t"], inp_pad, proj_pad),
                             pad2(params["ws_t"], inp_pad, proj_pad)],
                            axis=1).astype(bf16)                  # (inp_pad, 2*proj_pad)
    b_cat = jnp.concatenate([pad2(params["b1"], 1, proj_pad),
                             pad2(params["bs"], 1, proj_pad)], axis=1)  # f32
    w2 = pad2(params["w2_t"], proj_pad, proj_pad, bf16)
    b2 = pad2(params["b2"], 1, proj_pad)
    bn_g = pad2(params["bn_gamma"], 1, proj_pad)
    bn_b = pad2(params["bn_beta"], 1, proj_pad)
    ln_g = pad2(params["ln_gamma"], 1, proj_pad)
    ln_b = pad2(params["ln_beta"], 1, proj_pad)

    resident2 = lambda shape: pl.BlockSpec(shape, lambda *_: (0, 0))
    # TODO(synk): single-buffer the never-changing resident blocks
    # (pipeline_mode=pl.Buffered(1)) and K-tile w_cat when inp_pad*2*proj_pad
    # approaches v7x's 64 MiB VMEM.

    # ---- pass 1: x @ [W1|Ws] + b (cached to HBM) + BN sum / sumsq over real rows ----
    p1_vmem = (2 * tile * inp_pad * 2            # x tiles (bf16, double buffered)
               + 2 * inp_pad * 2 * proj_pad * 2  # resident w_cat (bf16)
               + 2 * tile * 2 * proj_pad * 2     # h_cat out tiles (bf16)
               + tile * 2 * proj_pad * 4         # f32 h_cat temporary
               + 2 * 8 * 2 * proj_pad * 4        # b_cat
               + 2 * 8 * proj_pad * 4)           # stats block
    stats, h_cat = pl.pallas_call(
        functools.partial(hcat_stats_kernel, n_real=n, n_pad=n_pad,
                          tile_rows=tile, tiles_per_shard=tiles_per_shard,
                          proj_pad=proj_pad),
        out_shape=(jax.ShapeDtypeStruct((stat_shards, 2, proj_pad), f32),
                   jax.ShapeDtypeStruct((n_pad, 2 * proj_pad), bf16)),
        grid=(stat_shards, tiles_per_shard),
        in_specs=[
            pl.BlockSpec((tile, inp_pad),
                         lambda c, i: (c * tiles_per_shard + i, 0)),   # x tile
            resident2((inp_pad, 2 * proj_pad)),                        # [W1 | Ws]
            resident2((1, 2 * proj_pad)),                              # [b1 | bs]
        ],
        out_specs=(
            pl.BlockSpec((None, 2, proj_pad), lambda c, i: (c, 0, 0)),  # per-shard stats
            pl.BlockSpec((tile, 2 * proj_pad),
                         lambda c, i: (c * tiles_per_shard + i, 0)),    # h_cat
        ),
        compiler_params=pltpu.CompilerParams(
            dimension_semantics=("parallel", "arbitrary"),
            vmem_limit_bytes=_vmem_limit(p1_vmem)),
        cost_estimate=pl.CostEstimate(
            flops=2 * n_pad * inp_pad * 2 * proj_pad,
            transcendentals=0,
            bytes_accessed=2 * (n_pad * inp_pad + inp_pad * 2 * proj_pad
                                + n_pad * 2 * proj_pad)
                           + 4 * (stat_shards * 2 * proj_pad + 2 * proj_pad)),
    )(xp, w_cat, b_cat)

    # ---- fold BatchNorm into per-feature scale/shift (plain XLA, done once) ----
    sums = jnp.sum(stats, axis=0)                       # (2, proj_pad)
    mean = sums[0:1, :] / n
    var = jnp.maximum(sums[1:2, :] / n - mean * mean, 0.0)
    bn_scale = bn_g * jax.lax.rsqrt(var + BN_EPS)       # (1, proj_pad)
    bn_shift = bn_b - mean * bn_scale                   # (1, proj_pad)

    # ---- pass 2: BN apply + ReLU + Linear2 + shortcut residual + LayerNorm ----
    p2_vmem = (2 * tile * 2 * proj_pad * 2     # h_cat tiles (bf16)
               + 2 * tile * proj_pad * 4       # out tiles (f32)
               + 2 * proj_pad * proj_pad * 2   # resident w2 (bf16)
               + tile * 2 * proj_pad * 4       # f32 temporaries
               + 5 * 2 * 8 * proj_pad * 4)     # scale/shift/b2/ln_g/ln_b
    out = pl.pallas_call(
        functools.partial(mi_apply_kernel, proj_dim=proj_dim, proj_pad=proj_pad),
        out_shape=jax.ShapeDtypeStruct((n_pad, proj_pad), x.dtype),
        grid=(n_tiles,),
        in_specs=[
            resident2((1, proj_pad)),                              # bn scale
            resident2((1, proj_pad)),                              # bn shift
            pl.BlockSpec((tile, 2 * proj_pad), lambda i: (i, 0)),  # h_cat tile
            resident2((proj_pad, proj_pad)),                       # w2 (bf16)
            resident2((1, proj_pad)),                              # b2
            resident2((1, proj_pad)),                              # ln gamma
            resident2((1, proj_pad)),                              # ln beta
        ],
        out_specs=pl.BlockSpec((tile, proj_pad), lambda i: (i, 0)),
        compiler_params=pltpu.CompilerParams(
            dimension_semantics=("parallel",),
            vmem_limit_bytes=_vmem_limit(p2_vmem)),
        cost_estimate=pl.CostEstimate(
            flops=2 * n_pad * proj_pad * proj_pad,
            transcendentals=n_pad,
            bytes_accessed=2 * (n_pad * 2 * proj_pad + proj_pad * proj_pad)
                           + 4 * (n_pad * proj_pad + 5 * proj_pad)),
    )(bn_scale, bn_shift, h_cat, w2, b2, ln_g, ln_b)

    return out[:n, :proj_dim]


# ------------------------------ params / reference ------------------------------
def init_params(key, inp_dim, proj_dim):
    """Deterministic parameter init mirroring the PyTorch module shapes."""
    ks = jax.random.split(key, 8)

    def linear_init(kw, kb, fan_in, fan_out):
        bound = 1.0 / jnp.sqrt(jnp.float32(fan_in))
        w = jax.random.uniform(kw, (fan_out, fan_in), jnp.float32, -bound, bound)
        b = jax.random.uniform(kb, (fan_out,), jnp.float32, -bound, bound)
        return w, b

    w1, b1 = linear_init(ks[0], ks[1], inp_dim, proj_dim)
    w2, b2 = linear_init(ks[2], ks[3], proj_dim, proj_dim)
    _, bs = linear_init(ks[4], ks[5], inp_dim, proj_dim)

    # reset_parameters(): shortcut weight ~ U(-0.01, 0.01), then unit diagonal.
    ws = jax.random.uniform(ks[6], (proj_dim, inp_dim), jnp.float32, -0.01, 0.01)
    min_dim = min(proj_dim, inp_dim)
    eye = jnp.zeros((proj_dim, inp_dim), jnp.float32).at[
        jnp.arange(min_dim), jnp.arange(min_dim)].set(1.0)
    ws = jnp.where(eye > 0, 1.0, ws)

    return {
        "w1_t": w1.T, "b1": b1.reshape(1, proj_dim),
        "bn_gamma": jnp.ones((1, proj_dim), jnp.float32),
        "bn_beta": jnp.zeros((1, proj_dim), jnp.float32),
        "w2_t": w2.T, "b2": b2.reshape(1, proj_dim),
        "ws_t": ws.T, "bs": bs.reshape(1, proj_dim),
        "ln_gamma": jnp.ones((1, proj_dim), jnp.float32),
        "ln_beta": jnp.zeros((1, proj_dim), jnp.float32),
    }


def mi_projection_ref(x, p, *, mxu_dtype=jnp.float32):
    """Pure-JAX reference.  mxu_dtype=bfloat16 mirrors the kernel's cast points."""
    f32 = jnp.float32
    lo = lambda a: a.astype(mxu_dtype)
    hi = lambda a: a.astype(f32)

    xq = lo(x)
    h1 = jnp.dot(xq, lo(p["w1_t"]), preferred_element_type=f32) + p["b1"]
    sc = jnp.dot(xq, lo(p["ws_t"]), preferred_element_type=f32) + p["bs"]

    mean = h1.mean(axis=0, keepdims=True)
    var = jnp.maximum((h1 * h1).mean(axis=0, keepdims=True) - mean * mean, 0.0)
    scale = p["bn_gamma"] * jax.lax.rsqrt(var + BN_EPS)
    shift = p["bn_beta"] - mean * scale

    h1 = jnp.maximum(hi(lo(h1)) * scale + shift, 0.0)       # lo() models the bf16 h_cat roundtrip
    h = jnp.dot(lo(h1), lo(p["w2_t"]), preferred_element_type=f32) + p["b2"] + hi(lo(sc))

    mu = h.mean(axis=-1, keepdims=True)
    v = jnp.maximum((h * h).mean(axis=-1, keepdims=True) - mu * mu, 0.0)
    return (h - mu) * jax.lax.rsqrt(v + LN_EPS) * p["ln_gamma"] + p["ln_beta"]


if __name__ == "__main__":
    # Small shapes; tile_rows=8 with stat_shards=2 forces a (2, 2) pass-1 grid with
    # one partially-padded and one fully-padded tile, exercising the masking paths.
    N, INP_DIM, PROJ_DIM = 20, 32, 64

    key = jax.random.PRNGKey(0)
    k_x, k_p = jax.random.split(key)
    x = jax.random.normal(k_x, (N, INP_DIM), jnp.float32)
    params = init_params(k_p, INP_DIM, PROJ_DIM)

    out = mi_projection(x, params, tile_rows=8)
    out = jax.block_until_ready(out)
    assert out.shape == (N, PROJ_DIM)

    # Tight check against a reference that mirrors the kernel's bf16 cast points.
    ref_bf16 = mi_projection_ref(x, params, mxu_dtype=jnp.bfloat16)
    assert jnp.allclose(out, ref_bf16, atol=5e-3, rtol=5e-3), "mismatch vs bf16-matched reference"

    # Loose sanity check against the pure-f32 module semantics (bf16 MXU precision).
    ref_f32 = mi_projection_ref(x, params)
    assert jnp.allclose(out, ref_f32, atol=0.15, rtol=0.1), "mismatch vs f32 reference"

    print("KERNEL_OK")
</pallas_src>

<mosaic_0001>
module attributes {stable_mosaic.version = 11 : i64} {
  func.func @hcat_stats_kernel(%arg0: i32, %arg1: i32, %arg2: memref<8x128xbf16, #tpu.memory_space<vmem>>, %arg3: memref<128x256xbf16, #tpu.memory_space<vmem>>, %arg4: memref<1x256xf32, #tpu.memory_space<vmem>>, %arg5: memref<1x2x128xf32, #tpu.memory_space<vmem>>, %arg6: memref<8x256xbf16, #tpu.memory_space<vmem>>) attributes {dimension_semantics = [#tpu.dimension_semantics<parallel>, #tpu.dimension_semantics<arbitrary>], iteration_bounds = array<i64: 2, 2>, scalar_prefetch = 0 : i64, scratch_operands = 0 : i64, tpu.core_type = #tpu.core_type<tc>, window_params = [{transform_indices = @transform_0, window_bounds = array<i64: 8, 128>}, {pipeline_mode = #tpu.pipeline_mode<synchronous>, transform_indices = @transform_1, window_bounds = array<i64: 128, 256>}, {pipeline_mode = #tpu.pipeline_mode<synchronous>, transform_indices = @transform_2, window_bounds = array<i64: 1, 256>}, {transform_indices = @transform_3, window_bounds = array<i64: 1, 2, 128>}, {transform_indices = @transform_4, window_bounds = array<i64: 8, 256>}]} {
    %c0_i32 = arith.constant 0 : i32
    %0 = arith.cmpi eq, %arg1, %c0_i32 : i32
    %1 = arith.extui %0 : i1 to i32
    %c0_i32_0 = arith.constant 0 : i32
    %2 = arith.cmpi ne, %1, %c0_i32_0 : i32
    scf.if %2 {
      %cst_11 = arith.constant 0.000000e+00 : f32
      %22 = vector.broadcast %cst_11 : f32 to vector<2x128xf32>
      %c0_12 = arith.constant 0 : index
      %c0_13 = arith.constant 0 : index
      %c0_14 = arith.constant 0 : index
      %23 = vector.load %arg5[%c0_12, %c0_13, %c0_14] : memref<1x2x128xf32, #tpu.memory_space<vmem>>, vector<1x2x128xf32>
      %24 = vector.shape_cast %23 : vector<1x2x128xf32> to vector<2x128xf32>
      %25 = vector.shape_cast %22 : vector<2x128xf32> to vector<1x2x128xf32>
      tpu.vector_store %arg5[%c0_12, %c0_13, %c0_14], %25 {strides = array<i32>} : memref<1x2x128xf32, #tpu.memory_space<vmem>>, vector<1x2x128xf32>,
    } else {
    }
    %c0 = arith.constant 0 : index
    %c0_1 = arith.constant 0 : index
    %3 = vector.load %arg2[%c0, %c0_1] : memref<8x128xbf16, #tpu.memory_space<vmem>>, vector<8x128xbf16>
    %c0_2 = arith.constant 0 : index
    %c0_3 = arith.constant 0 : index
    %4 = vector.load %arg3[%c0_2, %c0_3] : memref<128x256xbf16, #tpu.memory_space<vmem>>, vector<128x256xbf16>
    %cst = arith.constant dense<0.000000e+00> : vector<8x256xf32>
    %5 = tpu.matmul %3, %4, %cst {dimension_numbers = #tpu.dot_dimension_numbers<[1], [0], [0], [1], [0, 0, 1, 1], [], []>} : vector<8x128xbf16>, vector<128x256xbf16>, vector<8x256xf32> -> vector<8x256xf32>
    %c0_4 = arith.constant 0 : index
    %c0_5 = arith.constant 0 : index
    %6 = vector.load %arg4[%c0_4, %c0_5] : memref<1x256xf32, #tpu.memory_space<vmem>>, vector<1x256xf32>
    %7 = vector.broadcast %6 : vector<1x256xf32> to vector<8x256xf32>
    %8 = arith.addf %5, %7 : vector<8x256xf32>
    %9 = arith.truncf %8 : vector<8x256xf32> to vector<8x256xbf16>
    %c0_6 = arith.constant 0 : index
    %c0_7 = arith.constant 0 : index
    %10 = vector.load %arg6[%c0_6, %c0_7] : memref<8x256xbf16, #tpu.memory_space<vmem>>, vector<8x256xbf16>
    tpu.vector_store %arg6[%c0_6, %c0_7], %9 {strides = array<i32>} : memref<8x256xbf16, #tpu.memory_space<vmem>>, vector<8x256xbf16>,
    %11 = vector.extract_strided_slice %8 {offsets = [0, 0], sizes = [8, 128], strides = [1, 1]} : vector<8x256xf32> to vector<8x128xf32>
    %c2_i32 = arith.constant 2 : i32
    %12 = arith.muli %arg0, %c2_i32 : i32
    %13 = arith.addi %12, %arg1 : i32
    %c8_i32 = arith.constant 8 : i32
    %14 = arith.muli %13, %c8_i32 : i32
    %c8_i32_8 = arith.constant 8 : i32
    %15 = arith.addi %14, %c8_i32_8 : i32
    %c20_i32 = arith.constant 20 : i32
    %16 = arith.cmpi sle, %15, %c20_i32 : i32
    %17 = arith.extui %16 : i1 to i32
    %c0_i32_9 = arith.constant 0 : i32
    %18 = arith.cmpi ne, %17, %c0_i32_9 : i32
    scf.if %18 {
      %c0_11 = arith.constant 0 : index
      %c0_12 = arith.constant 0 : index
      %c0_13 = arith.constant 0 : index
      %22 = vector.load %arg5[%c0_11, %c0_12, %c0_13] : memref<1x2x128xf32, #tpu.memory_space<vmem>>, vector<1x1x128xf32>
      %23 = vector.shape_cast %22 : vector<1x1x128xf32> to vector<1x128xf32>
      %cst_14 = arith.constant dense<0.000000e+00> : vector<128xf32>
      %24 = vector.multi_reduction <add>, %11, %cst_14 [0] : vector<8x128xf32> to vector<128xf32>
      %25 = vector.shape_cast %24 : vector<128xf32> to vector<1x128xf32>
      %26 = arith.addf %23, %25 : vector<1x128xf32>
      %c0_15 = arith.constant 0 : index
      %c0_16 = arith.constant 0 : index
      %c0_17 = arith.constant 0 : index
      %27 = vector.load %arg5[%c0_15, %c0_16, %c0_17] : memref<1x2x128xf32, #tpu.memory_space<vmem>>, vector<1x1x128xf32>
      %28 = vector.shape_cast %27 : vector<1x1x128xf32> to vector<1x128xf32>
      %29 = vector.shape_cast %26 : vector<1x128xf32> to vector<1x1x128xf32>
      tpu.vector_store %arg5[%c0_15, %c0_16, %c0_17], %29 {strides = array<i32>} : memref<1x2x128xf32, #tpu.memory_space<vmem>>, vector<1x1x128xf32>,
      %c0_18 = arith.constant 0 : index
      %c1 = arith.constant 1 : index
      %c0_19 = arith.constant 0 : index
      %30 = vector.load %arg5[%c0_18, %c1, %c0_19] : memref<1x2x128xf32, #tpu.memory_space<vmem>>, vector<1x1x128xf32>
      %31 = vector.shape_cast %30 : vector<1x1x128xf32> to vector<1x128xf32>
      %32 = arith.mulf %11, %11 : vector<8x128xf32>
      %cst_20 = arith.constant dense<0.000000e+00> : vector<128xf32>
      %33 = vector.multi_reduction <add>, %32, %cst_20 [0] : vector<8x128xf32> to vector<128xf32>
      %34 = vector.shape_cast %33 : vector<128xf32> to vector<1x128xf32>
      %35 = arith.addf %31, %34 : vector<1x128xf32>
      %c0_21 = arith.constant 0 : index
      %c1_22 = arith.constant 1 : index
      %c0_23 = arith.constant 0 : index
      %36 = vector.load %arg5[%c0_21, %c1_22, %c0_23] : memref<1x2x128xf32, #tpu.memory_space<vmem>>, vector<1x1x128xf32>
      %37 = vector.shape_cast %36 : vector<1x1x128xf32> to vector<1x128xf32>
      %38 = vector.shape_cast %35 : vector<1x128xf32> to vector<1x1x128xf32>
      tpu.vector_store %arg5[%c0_21, %c1_22, %c0_23], %38 {strides = array<i32>} : memref<1x2x128xf32, #tpu.memory_space<vmem>>, vector<1x1x128xf32>,
    } else {
    }
    %true = arith.constant true
    %19 = arith.xori %16, %true : i1
    %20 = arith.extui %19 : i1 to i32
    %c0_i32_10 = arith.constant 0 : i32
    %21 = arith.cmpi ne, %20, %c0_i32_10 : i32
    scf.if %21 {
      %22 = tpu.iota {dimensions = array<i32: 0>} : vector<8x128xi32>
      %23 = vector.broadcast %14 : i32 to vector<8x128xi32>
      %24 = arith.addi %23, %22 : vector<8x128xi32>
      %c20_i32_11 = arith.constant 20 : i32
      %25 = vector.broadcast %c20_i32_11 : i32 to vector<8x128xi32>
      %26 = arith.cmpi slt, %24, %25 : vector<8x128xi32>
      %cst_12 = arith.constant 0.000000e+00 : f32
      %27 = vector.broadcast %cst_12 : f32 to vector<8x128xf32>
      %28 = arith.select %26, %11, %27 : vector<8x128xi1>, vector<8x128xf32>
      %c0_13 = arith.constant 0 : index
      %c0_14 = arith.constant 0 : index
      %c0_15 = arith.constant 0 : index
      %29 = vector.load %arg5[%c0_13, %c0_14, %c0_15] : memref<1x2x128xf32, #tpu.memory_space<vmem>>, vector<1x1x128xf32>
      %30 = vector.shape_cast %29 : vector<1x1x128xf32> to vector<1x128xf32>
      %cst_16 = arith.constant dense<0.000000e+00> : vector<128xf32>
      %31 = vector.multi_reduction <add>, %28, %cst_16 [0] : vector<8x128xf32> to vector<128xf32>
      %32 = vector.shape_cast %31 : vector<128xf32> to vector<1x128xf32>
      %33 = arith.addf %30, %32 : vector<1x128xf32>
      %c0_17 = arith.constant 0 : index
      %c0_18 = arith.constant 0 : index
      %c0_19 = arith.constant 0 : index
      %34 = vector.load %arg5[%c0_17, %c0_18, %c0_19] : memref<1x2x128xf32, #tpu.memory_space<vmem>>, vector<1x1x128xf32>
      %35 = vector.shape_cast %34 : vector<1x1x128xf32> to vector<1x128xf32>
      %36 = vector.shape_cast %33 : vector<1x128xf32> to vector<1x1x128xf32>
      tpu.vector_store %arg5[%c0_17, %c0_18, %c0_19], %36 {strides = array<i32>} : memref<1x2x128xf32, #tpu.memory_space<vmem>>, vector<1x1x128xf32>,
      %c0_20 = arith.constant 0 : index
      %c1 = arith.constant 1 : index
      %c0_21 = arith.constant 0 : index
      %37 = vector.load %arg5[%c0_20, %c1, %c0_21] : memref<1x2x128xf32, #tpu.memory_space<vmem>>, vector<1x1x128xf32>
      %38 = vector.shape_cast %37 : vector<1x1x128xf32> to vector<1x128xf32>
      %39 = arith.mulf %28, %28 : vector<8x128xf32>
      %cst_22 = arith.constant dense<0.000000e+00> : vector<128xf32>
      %40 = vector.multi_reduction <add>, %39, %cst_22 [0] : vector<8x128xf32> to vector<128xf32>
      %41 = vector.shape_cast %40 : vector<128xf32> to vector<1x128xf32>
      %42 = arith.addf %38, %41 : vector<1x128xf32>
      %c0_23 = arith.constant 0 : index
      %c1_24 = arith.constant 1 : index
      %c0_25 = arith.constant 0 : index
      %43 = vector.load %arg5[%c0_23, %c1_24, %c0_25] : memref<1x2x128xf32, #tpu.memory_space<vmem>>, vector<1x1x128xf32>
      %44 = vector.shape_cast %43 : vector<1x1x128xf32> to vector<1x128xf32>
      %45 = vector.shape_cast %42 : vector<1x128xf32> to vector<1x1x128xf32>
      tpu.vector_store %arg5[%c0_23, %c1_24, %c0_25], %45 {strides = array<i32>} : memref<1x2x128xf32, #tpu.memory_space<vmem>>, vector<1x1x128xf32>,
    } else {
    }
    return
  }
  func.func @transform_0(%arg0: i32, %arg1: i32) -> (i32, i32) {
    %c2_i32 = arith.constant 2 : i32
    %0 = arith.muli %arg0, %c2_i32 : i32
    %1 = arith.addi %0, %arg1 : i32
    %c0_i32 = arith.constant 0 : i32
    %c0_i32_0 = arith.constant 0 : i32
    return %1, %c0_i32 : i32, i32
  }
  func.func @transform_1(%arg0: i32, %arg1: i32) -> (i32, i32) {
    %c0_i32 = arith.constant 0 : i32
    %c0_i32_0 = arith.constant 0 : i32
    %c0_i32_1 = arith.constant 0 : i32
    return %c0_i32, %c0_i32_0 : i32, i32
  }
  func.func @transform_2(%arg0: i32, %arg1: i32) -> (i32, i32) {
    %c0_i32 = arith.constant 0 : i32
    %c0_i32_0 = arith.constant 0 : i32
    %c0_i32_1 = arith.constant 0 : i32
    return %c0_i32, %c0_i32_0 : i32, i32
  }
  func.func @transform_3(%arg0: i32, %arg1: i32) -> (i32, i32, i32) {
    %c0_i32 = arith.constant 0 : i32
    %c0_i32_0 = arith.constant 0 : i32
    %c0_i32_1 = arith.constant 0 : i32
    return %arg0, %c0_i32, %c0_i32_0 : i32, i32, i32
  }
  func.func @transform_4(%arg0: i32, %arg1: i32) -> (i32, i32) {
    %c2_i32 = arith.constant 2 : i32
    %0 = arith.muli %arg0, %c2_i32 : i32
    %1 = arith.addi %0, %arg1 : i32
    %c0_i32 = arith.constant 0 : i32
    %c0_i32_0 = arith.constant 0 : i32
    return %1, %c0_i32 : i32, i32
  }
}

</mosaic_0001>

<bundles_post_ra>
// kernel: tpu_custom_call.1
= control target key start
LH: loop header
LB: loop body
LE: loop exit
PB: predicated region body
PF: predicated region fallthrough
CT: control target
= control target key end

     0   :  { %s1435_s0 = inlined_call_operand.hbm [shape: bf16[32,128], index: 0, kind: input, shape index: {}]   ;;  %s1436_s1 = inlined_call_operand.hbm [shape: bf16[128,256], index: 1, kind: input, shape index: {}]   ;;  %s1437_s2 = inlined_call_operand.vmem [shape: f32[1,256], index: 2, kind: input, shape index: {}]   ;;  %s1438_s3 = inlined_call_operand.hbm [shape: f32[2,2,128], index: 3, kind: output, shape index: {0}]   ;;  %s1439_s4 = inlined_call_operand.hbm [shape: bf16[32,256], index: 4, kind: output, shape index: {1}]  }
   0x1   :  { %1457 = sst [smem:[#allocation21_spill]] %s1436_s1 }
   0x2   :  { %1458 = sst [smem:[#allocation22_spill]] %s1438_s3 }
   0x3   :  { %1459 = sst [smem:[#allocation23_spill]] %s1439_s4 }
   0x4   :  { %10 = vsyncpa [#allocation3], 0 }
   0x5   :  { %12 = vsyncpa [#allocation3 + $0x1], 0 }
   0x6   :  { %13 = vsyncpa [#allocation6], 0 }
   0x7   :  { %14 = vsyncpa [#allocation4], 0 }
   0x8   :  { %16 = vsyncpa [#allocation4 + $0x1], 0 }
   0x9   :  { %17 = vsyncpa [#allocation9], 0 }
   0xa   :  { %19 = vsyncpa [#allocation9 + $0x1], 0  ;;  %s1094_s15 = smov 0   ;;  %s1096_s16 = smov 0  }
   0xb   :  { %s1098_s17 = smov 0   ;;  %s1100_s18 = smov 0  }
   0xc   :  { %s1102_s19 = smov 0   ;;  %s1104_s20 = smov 0  }
   0xd   :  { %s1106_s21 = smov 0   ;;  %s1108_s22 = smov 0  }
   0xe   :  { %s1110_s23 = smov 0   ;;  %s1112_s24 = smov 0  }
   0xf   :  { %s1114_s25 = smov 0  }
  0x10 LB: > { %1460 = sst [smem:[#allocation14_spill]] %s1019_s15  ;;  %s648_s26 = sadd.s32 4294967295, %s1059_s25   ;;  %s1059_s25 = sphi %s1114_s25, %s25_s25   ;;  %s1055_s24 = sphi %s1112_s24, %s1504_s24   ;;  %s1051_s23 = sphi %s1110_s23, %s1503_s23   ;;  %s1047_s22 = sphi %s1108_s22, %s1502_s22   ;;  %s1043_s21 = sphi %s1106_s21, %s1495_s21   ;;  %s1039_s20 = sphi %s1104_s20, %s1501_s20   ;;  %s1035_s19 = sphi %s1102_s19, %s1500_s19   ;;  %s1031_s18 = sphi %s1100_s18, %s1499_s18   ;;  %s1027_s17 = sphi %s1098_s17, %s1498_s17   ;;  %s1023_s16 = sphi %s1096_s16, %s1497_s16   ;;  %s1019_s15 = sphi %s1094_s15, %s1496_s15  }
  0x11   : > { %1461 = sst [smem:[#allocation15_spill]] %s1031_s18  ;;  %s649_s27 = sadd.s32 4294967294, %s1059_s25  }
  0x12   : > { %1462 = sst [smem:[#allocation16_spill]] %s1051_s23  ;;  %p61_p0 = scmp.ne.s32.totalorder %s1035_s19, %s1031_s18 }
  0x13   : > { %p1153_p1 = scmp.eq.s32.totalorder %s648_s26, 0  ;;  %p126_p2 = scmp.ne.s32.totalorder %s1027_s17, %s1023_s16 }
  0x14   : > { %p1159_p3 = scmp.eq.s32.totalorder %s648_s26, 3  ;;  %p132_p5 = scmp.ne.s32.totalorder %s1023_s16, %s1019_s15 }
  0x15   : > { %s1463_s28 = scalar_select %p1153_p1, 1, 0 }
  0x16   : > { %s1464_s29 = scalar_select %p1159_p3, 1, 0 }
  0x17   : > { %p1165_p4 = por %p1153_p1, %p61_p0  ;;  %p1173_p6 = por %p1159_p3, %p126_p2 }
  0x18   : > { %p133_p7 = scmp.eq.s32.totalorder %s649_s27, 3  ;;  %p654_p8 = scmp.ge.s32.totalorder %s1059_s25, 1 }
  0x19   : > { %s1465_s30 = scalar_select %p1165_p4, 1, 0 }
  0x1a   : > { %s1466_s5 = scalar_select %p1173_p6, 1, 0 }
  0x1b   : > { %p170_p9 = scmp.lt.s32.totalorder %s1059_s25, 5  ;;  %p1179_p10 = por %p133_p7, %p132_p5 }
  0x1c   : > { %1467 = sst [smem:[#allocation17_spill]] %s1466_s5  ;;  %p1183_p11 = por %p133_p7, %p61_p0 }
  0x1d   : > { %s1468_s6 = scalar_select %p1179_p10, 1, 0 }
  0x1e   : > { %s1470_s7 = scalar_select %p1183_p11, 1, 0 }
  0x1f   : > { %1469 = sst [smem:[#allocation18_spill]] %s1468_s6  ;;  %p1187_p12 = pnand %p654_p8, %p170_p9 }
  0x20   : > { %1471 = sst [smem:[#allocation19_spill]] %s1470_s7  ;;  %s1061_s9 = smov [#allocation5]  }
  0x21   : > { %s1472_s8 = scalar_select %p1187_p12, 1, 0 }
  0x22   : > { %p707_p13 = pneg %p1187_p12  ;;  %s182_s10 = sshll.u32 %s1061_s9, 4  ;;  %s183_s10 = int_to_ptr.vmem [resolvable:$true] %s182_s10 }
  0x23   : > { %s1474_s1 = sld [smem:[#allocation21_spill]] }
  0x24   : > { %p1195_p2 = pnand %p707_p13, %p1153_p1 }
  0x26   : > { %p845_p5 = pneg %p1195_p2 }
  0x29   : > { %s843_s14 = scalar_lea.hbm %s1474_s1, 2048 }
  0x2a   : > { %p844_p0 = scmp.ne.s32.totalorder %s1474_s1, %s843_s14  ;;  %p850_p9 = scmp.lt.u32.totalorder %s843_s14, %s1474_s1 }
  0x2c   : > { %p846_p7 = pnand %p845_p5, %p844_p0 }
  0x2e   : > { %p847_p8 = pneg %p846_p7 }
  0x30   : > { %p852_p13 = pnand %p850_p9, %p847_p8 }
  0x32   : > { %855 = shalt.err (!%p852_p13)
}
  0x33   : > { %s856_s18 = scalar_lea.vmem %s183_s10, 2048  ;;  %p864_p1 = scmp.lt.s32.totalorder %s183_s10, %s183_s10 }
  0x34   : > { %p857_p11 = scmp.ne.s32.totalorder %s183_s10, %s856_s18  ;;  %p865_p4 = scmp.lt.s32.totalorder %s856_s18, %s856_s18 }
  0x36   : > { %p859_p10 = pnand %p857_p11, %p845_p5  ;;  %p866_p12 = por %p865_p4, %p864_p1 }
  0x38   : > { %p860_p6 = pneg %p859_p10 }
  0x3a   : > { %p867_p3 = pnand %p866_p12, %p860_p6 }
  0x3c   : > { %870 = shalt.err (!%p867_p3)
}
  0x3d   : > { %s1062_s12 = smov 128   ;;  %s1063_s7 = smov 8  }
  0x3e   : > { %710 = dma.hbm_to_vmem [thread:$0]  (!%p1195_p2), %s1474_s1, 2048, %s183_s10, [#allocation6], %s1062_s12, %s1062_s12, %s1063_s7  }
  0x3f   : > { %s34_s14 = sadd.s32 1, %s1051_s23  ;;  %s37_s26 = sadd.s32 1, %s1055_s24 }
  0x40   : > { %p35_p1 = scmp.ge.s32.totalorder %s34_s14, 2  ;;  %s650_s27 = sshll.u32 %s1055_s24, 1 }
  0x41   : > { %s48_s9 = sadd.s32 1, %s1039_s20  ;;  %s42_s6 = sadd.s32 %s1051_s23, %s650_s27 }
  0x42   : > { %s1506_s14 = smov (%p35_p1, %s34_s14), 0  ;;  %s1508_s26 = smov (!%p35_p1, %s37_s26), %s1055_s24 }
  0x43   : > { %p55_p3 = scmp.ne.s32.totalorder %s1039_s20, %s1035_s19  ;;  %p39_p4 = scmp.ge.s32.totalorder %s1508_s26, 2 }
  0x44   : > { %p56_p6 = scmp.eq.s32.totalorder %s1059_s25, 0  ;;  %s116_s11 = sadd.s32 1, %s1027_s17 }
  0x45   : > { %p1475_p10 = scmp.ne.s32.totalorder %s1464_s29, 0  ;;  %s1510_s26 = smov (%p39_p4, %s1508_s26), 0 }
  0x46   : > { %p1235_p12 = por %p56_p6, %p55_p3  ;;  %p723_p2 = scmp.lt.s32.totalorder %s1059_s25, 4 }
  0x47   : > { %p1229_p11 = por %p1475_p10, %p55_p3  ;;  %s651_s7 = sshll.u32 %s1510_s26, 1 }
  0x48   : > { %s113_s13 = ssub.s32 %s1055_s24, %s1510_s26  ;;  %s44_s18 = sadd.s32 %s651_s7, %s1506_s14 }
  0x49   : > { %s1476_s10 = scalar_select %p1229_p11, 1, 0 }
  0x4a   : > { %p114_p0 = scmp.eq.s32.totalorder %s113_s13, 0  ;;  %s45_s29 = ssub.s32 %s42_s6, %s44_s18 }
  0x4b   : > { %1477 = sst [smem:[#allocation20_spill]] %s1476_s10  ;;  %s199_s27 = sand.u32 1, %s1039_s20  }
  0x4c   : > { %p46_p5 = scmp.eq.s32.totalorder %s45_s29, 0  ;;  %s657_s15 = sshll.u32 %s199_s27, 2 }
  0x4d   : > { %s1246_s1 = scalar_select %p114_p0, %s1027_s17, %s116_s11  }
  0x4e   : > { %s1249_s23 = scalar_select %p46_p5, %s1039_s20, %s48_s9  }
  0x4f   : > { %s659_s4 = sshll.u32 %s42_s6, 6  ;;  %s203_s7 = scalar_lea.vmem [#allocation2], %s657_s15 }
  0x50   : > { %s1254_s5 = scalar_lea.hbm %s1435_s0, %s659_s4  ;;  %s212_s13 = sshll.u32 %s203_s7, 4  ;;  %s1264_s13 = int_to_ptr.vmem [resolvable:$true] %s212_s13 }
  0x51   : > { %p1260_p7 = pnand %p723_p2, %p1235_p12  ;;  %s200_s6 = scalar_lea.sflag [#allocation3], %s199_s27 }
  0x52   : > { %s871_s3 = scalar_lea.hbm %s1254_s5, 64  ;;  %s876_s9 = scalar_lea.hbm %s1435_s0, 256 }
  0x53   : > { %p872_p8 = scmp.ne.s32.totalorder %s1254_s5, %s871_s3  ;;  %p873_p9 = pneg %p1260_p7 }
  0x54   : > { %p877_p3 = scmp.lt.u32.totalorder %s1254_s5, %s1435_s0  ;;  %p878_p4 = scmp.lt.u32.totalorder %s876_s9, %s871_s3 }
  0x55   : > { %p874_p13 = pnand %p873_p9, %p872_p8  ;;  %p880_p10 = scmp.lt.u32.totalorder %s871_s3, %s1254_s5 }
  0x56   : > { %p879_p6 = por %p878_p4, %p877_p3 }
  0x57   : > { %p875_p1 = pneg %p874_p13 }
  0x58   : > { %p881_p12 = por %p880_p10, %p879_p6 }
  0x5a   : > { %p882_p2 = pnand %p881_p12, %p875_p1 }
  0x5c   : > { %885 = shalt.err (!%p882_p2)
}
  0x5d   : > { %s886_s18 = scalar_lea.vmem %s1264_s13, 64  ;;  %s1064_s29 = smov [#allocation2]  }
  0x5e   : > { %p887_p0 = scmp.ne.s32.totalorder %s1264_s13, %s886_s18  ;;  %s891_s27 = sshll.u32 %s1064_s29, 4  ;;  %s892_s27 = int_to_ptr.vmem [resolvable:$false] %s891_s27 }
  0x5f   : > { %s893_s7 = scalar_lea.vmem %s892_s27, 128  ;;  %p894_p13 = scmp.lt.s32.totalorder %s1264_s13, %s892_s27 }
  0x60   : > { %p889_p5 = pnand %p887_p0, %p873_p9  ;;  %p895_p3 = scmp.lt.s32.totalorder %s893_s7, %s886_s18 }
  0x62   : > { %p890_p8 = pneg %p889_p5  ;;  %p896_p4 = por %p895_p3, %p894_p13 }
  0x64   : > { %p897_p6 = pnand %p896_p4, %p890_p8 }
  0x66   : > { %900 = shalt.err (!%p897_p6)
}
  0x67   : > { %714 = dma.hbm_to_vmem [thread:$0]  (!%p1260_p7), %s1254_s5, 64, %s1264_s13, %s200_s6  }
  0x68   : > { %p1480_p1 = scmp.ne.s32.totalorder %s1472_s8, 0 }
  0x69   : > { %s1294_s3 = sand.u32 (!%p1480_p1), 1, %s1035_s19   ;;  %p1481_p9 = scmp.ne.s32.totalorder (!%p1480_p1), %s1465_s30, 0 }
  0x6a   : > { %221 = sbr.rel (%p1480_p1) target bundleno = 467 (0x1d3), region = 32  ;;  %s661_s4 = sshll.u32 (!%p1480_p1), %s1294_s3, 2 }
  0x6b   : > { %s224_s15 = scalar_lea.sflag (!%p1480_p1), [#allocation3], %s1294_s3  ;;  %s1298_s9 = scalar_lea.vmem (!%p1480_p1), [#allocation2], %s661_s4 }
  0x71   : > { %1002 = dma.done.wait (%p1481_p9), %s224_s15, 64  }
  0x72   : > { %1004 = vsyncadd (%p1481_p9), %s224_s15, 4294967232  ;;  %p1482_p7 = scmp.ne.s32.totalorder %s1463_s28, 0 }
  0x74   : > { %1006 = dma.done.wait (%p1482_p7), [#allocation6], 2048  }
  0x75   : > { %1008 = vsyncadd (%p1482_p7), [#allocation6], 4294965248  ;;  %s251_s5 = sand.u32 1, %s1023_s16   ;;  %s664_s8 = sshll.u32 %s1294_s3, 3 }
  0x76   : > { %s663_s13 = sshll.u32 %s251_s5, 1  ;;  %s1314_s6 = scalar_lea.vmem [#allocation8], %s664_s8 }
  0x77   : > { %s1312_s11 = scalar_lea.vmem [#allocation7], %s663_s13  ;;  %p665_p10 = scmp.ne.s32.totalorder %s1043_s21, 0 }
  0x78   : > { %v1065_v0 = vmov (!%p665_p10), 0.0  }
  0x79   : > { %269 = sbr.rel (%p665_p10) target bundleno = 128 (0x80), region = 44  ;;  %270 = vst [vmem:[%s1312_s11] sm:$0x3] (!%p665_p10), %v1065_v0 }
  0x80 PF: > { %v819_v1 = vld [vmem:[#allocation5 + $0x4] ss:$8 sps:$4 sm:$0xff]   ;;  %v821_v2 = vld [vmem:[#allocation5] ss:$8 sps:$4 sm:$0xff]   ;;  %v1066_v3 = vmov 0   ;;  %s683_s28 = sshll.u32 %s1047_s22, 1  ;;  %v290_v19 = vlaneseq }
  0x81   : > { %412 = vmatprep.mubr.bf16.mxu0 %v1066_v3  ;;  %380 = vmatprep.subr.bf16.mxu0 %v819_v1  ;;  %v822_v4 = vld [vmem:[#allocation5 + $0x14] ss:$8 sps:$4 sm:$0xff]   ;;  %v824_v5 = vld [vmem:[#allocation5 + $0x10] ss:$8 sps:$4 sm:$0xff]   ;;  %v825_v6 = vld [vmem:[#allocation5 + $0x24] ss:$8 sps:$4 sm:$0xff]   ;;  %s1321_s30 = sadd.s32 %s1043_s21, %s683_s28 }
  0x82   : > { %381 = vmatpush1.bf16.msra.mxu0 %v821_v2  ;;  %v827_v7 = vld [vmem:[#allocation5 + $0x20] ss:$8 sps:$4 sm:$0xff]   ;;  %v828_v8 = vld [vmem:[#allocation5 + $0x34] ss:$8 sps:$4 sm:$0xff]   ;;  %v830_v9 = vld [vmem:[#allocation5 + $0x30] ss:$8 sps:$4 sm:$0xff]  }
  0x83   : > { %382 = vmatprep.subr.bf16.mxu0 %v822_v4  ;;  %v831_v10 = vld [vmem:[#allocation5 + $0x44] ss:$8 sps:$4 sm:$0xff]   ;;  %v833_v11 = vld [vmem:[#allocation5 + $0x40] ss:$8 sps:$4 sm:$0xff]   ;;  %v834_v12 = vld [vmem:[#allocation5 + $0x54] ss:$8 sps:$4 sm:$0xff]  }
  0x84   : > { %v836_v13 = vld [vmem:[#allocation5 + $0x50] ss:$8 sps:$4 sm:$0xff]   ;;  %v837_v14 = vld [vmem:[#allocation5 + $0x64] ss:$8 sps:$4 sm:$0xff]   ;;  %v839_v15 = vld [vmem:[#allocation5 + $0x60] ss:$8 sps:$4 sm:$0xff]  }
  0x85   : > { %v840_v16 = vld [vmem:[#allocation5 + $0x74] ss:$8 sps:$4 sm:$0xff]   ;;  %v842_v17 = vld [vmem:[#allocation5 + $0x70] ss:$8 sps:$4 sm:$0xff]   ;;  %s684_s10 = sshll.u32 %s1321_s30, 3  ;;  %v291_v20 = vshrl.u32 %v290_v19, 7 }
  0x86   : > { %383 = vmatpush1.bf16.msra.mxu0 %v824_v5  ;;  %v271_v18 = vld [vmem:[%s1298_s9] sm:$0xf]  ;;  %s1326_s12 = sadd.s32 8, %s684_s10 }
  0x87   : > { %384 = vmatprep.subr.bf16.mxu0 %v825_v6  ;;  %v292_v21 = vsub.s32 0, %v291_v20  ;;  %v288_v22 = vld [vmem:[%s1437_s2] sm:$0x3]  ;;  %v296_v23 = vsub.s32 1, %v291_v20  ;;  %p685_p12 = scmp.gt.s32.totalorder %s1326_s12, 20 }
  0x88   : > { %v438_v43 = vld [vmem:[%s1312_s11] sm:$0x1] (!%p685_p12)  ;;  %v447_v46 = vld [vmem:[%s1312_s11 + $0x1] sm:$0x1] (!%p685_p12) }
  0x89   : > { %v293_v24 = vrot.slane %v288_v22, %v292_v21  ;;  %v297_v25 = vrot.slane %v288_v22, %v296_v23 }
  0x8a   : > { %385 = vmatpush1.bf16.msra.mxu0 %v827_v7 }
  0x8b   : > { %386 = vmatprep.subr.bf16.mxu0 %v828_v8 }
  0x8e   : > { %387 = vmatpush1.bf16.msra.mxu0 %v830_v9 }
  0x8f   : > { %388 = vmatprep.subr.bf16.mxu0 %v831_v10 }
  0x92   : > { %389 = vmatpush1.bf16.msra.mxu0 %v833_v11 }
  0x93   : > { %390 = vmatprep.subr.bf16.mxu0 %v834_v12 }
  0x96   : > { %391 = vmatpush1.bf16.msra.mxu0 %v836_v13 }
  0x97   : > { %392 = vmatprep.subr.bf16.mxu0 %v837_v14 }
  0x9a   : > { %393 = vmatpush1.bf16.msra.mxu0 %v839_v15 }
  0x9b   : > { %394 = vmatprep.subr.bf16.mxu0 %v840_v16 }
  0x9e   : > { %395 = vmatpush1.bf16.msra.mxu0 %v842_v17 }
  0xa1   : > { %413 = vmatmul.mubr.bf16.vlgmr.msra.gmra.mrb[0].mxu0 %v271_v18 }
 0x174   : > { %v414_v26 = vpop.f32.mrb[0].mxu0  ;;  %437 = sbr.rel (%p685_p12) target bundleno = 392 (0x188), region = 48 }
 0x175   : > { %v415_v27 = vadd.f32 %v414_v26, %v293_v24  ;;  %v416_v28 = vpop.f32.mrb[1].mxu0 }
 0x176   : > { %v417_v29 = vadd.f32 %v416_v28, %v297_v25  ;;  %v418_v30 = vpop.f32.mrb[2].mxu0 }
 0x177   : > { %v419_v31 = vpop.f32.mrb[3].mxu0  ;;  %v439_v33 = vrot.slane (!%p685_p12), %v415_v27, 4  ;;  %v448_v34 = vmul.f32 (!%p685_p12), %v415_v27, %v415_v27 }
 0x178   : > { %v695_v32 = vpack.c.bf16 %v417_v29, %v415_v27 }
 0x179   : > { %v440_v35 = vadd.f32 (!%p685_p12), %v439_v33, %v415_v27  ;;  %v449_v36 = vrot.slane (!%p685_p12), %v448_v34, 4 }
 0x17a   : > { %429 = vst [vmem:[%s1314_s6] sm:$0xff] %v695_v32 }
 0x17b   : > { %v441_v37 = vrot.slane %v440_v35, 2  ;;  %v450_v38 = vadd.f32 %v449_v36, %v448_v34 }
 0x17d   : > { %v442_v39 = vadd.f32 %v441_v37, %v440_v35  ;;  %v451_v40 = vrot.slane %v450_v38, 2 }
 0x17f   : > { %v443_v41 = vrot.slane %v442_v39, 1  ;;  %v452_v42 = vadd.f32 %v451_v40, %v450_v38 }
 0x181   : > { %v444_v44 = vadd.f32 %v443_v41, %v442_v39  ;;  %v453_v45 = vrot.slane %v452_v42, 1 }
 0x183   : > { %v445_v47 = vadd.f32 %v444_v44, %v438_v43  ;;  %v454_v48 = vadd.f32 %v453_v45, %v452_v42 }
 0x185   : > { %446 = vst [vmem:[%s1312_s11] sm:$0x1] %v445_v47  ;;  %v455_v49 = vadd.f32 %v454_v48, %v447_v46 }
 0x187   : > { %456 = vst [vmem:[%s1312_s11 + $0x1] sm:$0x1] %v455_v49 }
 0x188 PF: > { %p686_p2 = scmp.le.s32.totalorder %s1326_s12, 20 }
 0x189   : > { %v463_v50 = vstv (!%p686_p2), %s684_s10 }
 0x18a   : > { %460 = sbr.rel (%p686_p2) target bundleno = 415 (0x19f), region = 52  ;;  %v464_v51 = vadd.s32 (!%p686_p2), %v463_v50, %v291_v20 }
 0x18c   : > { %vm465_vm0 = vcmp.lt.s32.totalorder (!%p686_p2), %v464_v51, 20  ;;  %v467_v63 = vld [vmem:[%s1312_s11] sm:$0x1] (!%p686_p2) }
 0x18d   : > { %v466_v52 = vsel (!%p686_p2), %vm465_vm0, %v415_v27, 0.0 }
 0x18e   : > { %v468_v53 = vrot.slane (!%p686_p2), %v466_v52, 4  ;;  %v477_v54 = vmul.f32 (!%p686_p2), %v466_v52, %v466_v52  ;;  %v476_v2 = vld [vmem:[%s1312_s11 + $0x1] sm:$0x1] (!%p686_p2) }
 0x190   : > { %v469_v55 = vadd.f32 (!%p686_p2), %v468_v53, %v466_v52  ;;  %v478_v56 = vrot.slane (!%p686_p2), %v477_v54, 4 }
 0x192   : > { %v470_v57 = vrot.slane %v469_v55, 2  ;;  %v479_v58 = vadd.f32 %v478_v56, %v477_v54 }
 0x194   : > { %v471_v59 = vadd.f32 %v470_v57, %v469_v55  ;;  %v480_v60 = vrot.slane %v479_v58, 2 }
 0x196   : > { %v472_v61 = vrot.slane %v471_v59, 1  ;;  %v481_v62 = vadd.f32 %v480_v60, %v479_v58 }
 0x198   : > { %v473_v0 = vadd.f32 %v472_v61, %v471_v59  ;;  %v482_v1 = vrot.slane %v481_v62, 1 }
 0x19a   : > { %v474_v3 = vadd.f32 %v473_v0, %v467_v63  ;;  %v483_v4 = vadd.f32 %v482_v1, %v481_v62 }
 0x19c   : > { %475 = vst [vmem:[%s1312_s11] sm:$0x1] %v474_v3  ;;  %v484_v5 = vadd.f32 %v483_v4, %v476_v2 }
 0x19e   : > { %485 = vst [vmem:[%s1312_s11 + $0x1] sm:$0x1] %v484_v5 }
 0x19f PF: > { %s1483_s21 = sld [smem:[#allocation17_spill]]  ;;  %s689_s27 = sshll.u32 %s1047_s22, 5 }
 0x1a0   : > { %s1484_s15 = sld [smem:[#allocation22_spill]]  ;;  %s505_s13 = sshll.u32 %s1312_s11, 4  ;;  %s506_s13 = int_to_ptr.vmem [resolvable:$true] %s505_s13 }
 0x1a1   : > { %s487_s28 = scalar_lea.sflag [#allocation4], %s251_s5  ;;  %s901_s10 = scalar_lea.vmem %s506_s13, 32 }
 0x1a2   : > { %p902_p0 = scmp.ne.s32.totalorder %s506_s13, %s901_s10  ;;  %s1067_s12 = smov [#allocation7]  }
 0x1a3   : > { %s905_s18 = sshll.u32 %s1067_s12, 4  ;;  %s906_s18 = int_to_ptr.vmem [resolvable:$false] %s905_s18 }
 0x1a4   : > { %s907_s29 = scalar_lea.vmem %s906_s18, 64  ;;  %p908_p3 = scmp.lt.s32.totalorder %s506_s13, %s906_s18 }
 0x1a5   : > { %p1486_p5 = scmp.ne.s32.totalorder %s1483_s21, 0  ;;  %p909_p4 = scmp.lt.s32.totalorder %s907_s29, %s901_s10 }
 0x1a6   : > { %s1485_s9 = smov %s1484_s15  ;;  %s1348_s8 = scalar_lea.hbm %s1484_s15, %s689_s27 }
 0x1a7   : > { %p903_p8 = pnand %p902_p0, %p1486_p5  ;;  %p910_p6 = por %p909_p4, %p908_p3 }
 0x1a9   : > { %p904_p13 = pneg %p903_p8 }
 0x1ab   : > { %p911_p1 = pnand %p910_p6, %p904_p13 }
 0x1ad   : > { %914 = shalt.err (!%p911_p1)
}
 0x1ae   : > { %s915_s22 = scalar_lea.hbm %s1348_s8, 32  ;;  %s919_s27 = scalar_lea.hbm %s1485_s9, 64 }
 0x1af   : > { %p916_p9 = scmp.ne.s32.totalorder %s1348_s8, %s915_s22  ;;  %p920_p12 = scmp.lt.u32.totalorder %s1348_s8, %s1485_s9 }
 0x1b0   : > { %p921_p2 = scmp.lt.u32.totalorder %s919_s27, %s915_s22  ;;  %p923_p8 = scmp.lt.u32.totalorder %s915_s22, %s1348_s8 }
 0x1b1   : > { %p917_p7 = pnand %p916_p9, %p1486_p5 }
 0x1b2   : > { %p922_p0 = por %p921_p2, %p920_p12 }
 0x1b3   : > { %p918_p10 = pneg %p917_p7 }
 0x1b4   : > { %p924_p13 = por %p923_p8, %p922_p0 }
 0x1b6   : > { %p925_p3 = pnand %p924_p13, %p918_p10 }
 0x1b8   : > { %928 = shalt.err (!%p925_p3)
}
 0x1b9   : > { %703 = dma.vmem_to_hbm [thread:$0]  (%p1486_p5), %s506_s13, 32, %s1348_s8, %s487_s28  }
 0x1ba   : > { %s696_s10 = sshll.u32 %s1321_s30, 7  ;;  %s521_s12 = sshll.u32 %s1314_s6, 4  ;;  %s522_s12 = int_to_ptr.vmem [resolvable:$true] %s521_s12 }
 0x1bb   : > { %s1488_s5 = sld [smem:[#allocation23_spill]]  ;;  %s492_s22 = scalar_lea.sflag [#allocation9], %s1294_s3 }
 0x1bc   : > { %s929_s27 = scalar_lea.vmem %s522_s12, 128  ;;  %s1068_s21 = smov [#allocation8]  }
 0x1bd   : > { %p930_p4 = scmp.ne.s32.totalorder %s522_s12, %s929_s27  ;;  %s933_s7 = sshll.u32 %s1068_s21, 4  ;;  %s934_s7 = int_to_ptr.vmem [resolvable:$false] %s933_s7 }
 0x1be   : > { %s935_s4 = scalar_lea.vmem %s934_s7, 256  ;;  %p936_p9 = scmp.lt.s32.totalorder %s522_s12, %s934_s7 }
 0x1bf   : > { %p931_p6 = pnand %p930_p4, %p1229_p11  ;;  %p937_p5 = scmp.lt.s32.totalorder %s935_s4, %s929_s27 }
 0x1c1   : > { %s1375_s11 = scalar_lea.hbm %s1488_s5, %s696_s10  ;;  %p932_p1 = pneg %p931_p6 }
 0x1c2   : > { %p938_p7 = por %p937_p5, %p936_p9 }
 0x1c4   : > { %p939_p10 = pnand %p938_p7, %p932_p1 }
 0x1c6   : > { %942 = shalt.err (!%p939_p10)
}
 0x1c7   : > { %s943_s3 = scalar_lea.hbm %s1375_s11, 128  ;;  %s947_s8 = scalar_lea.hbm %s1488_s5, 512 }
 0x1c8   : > { %p944_p12 = scmp.ne.s32.totalorder %s1375_s11, %s943_s3  ;;  %p948_p8 = scmp.lt.u32.totalorder %s1375_s11, %s1488_s5 }
 0x1c9   : > { %p949_p13 = scmp.lt.u32.totalorder %s947_s8, %s943_s3  ;;  %p951_p4 = scmp.lt.u32.totalorder %s943_s3, %s1375_s11 }
 0x1ca   : > { %p945_p2 = pnand %p944_p12, %p1229_p11 }
 0x1cb   : > { %p950_p3 = por %p949_p13, %p948_p8 }
 0x1cc   : > { %p946_p0 = pneg %p945_p2 }
 0x1cd   : > { %p952_p6 = por %p951_p4, %p950_p3 }
 0x1cf   : > { %p953_p1 = pnand %p952_p6, %p946_p0 }
 0x1d1   : > { %956 = shalt.err (!%p953_p1)
}
 0x1d2   : > { %704 = dma.vmem_to_hbm [thread:$0]  (%p1229_p11), %s522_s12, 128, %s1375_s11, %s492_s22  }
 0x1d3 PF: > { %s1489_s10 = sld [smem:[#allocation14_spill]]  ;;  %s1490_s18 = sld [smem:[#allocation18_spill]] }
 0x1d4   : > { %p725_p9 = scmp.ge.s32.totalorder %s1059_s25, 2 }
 0x1d9   : > { %s533_s29 = sand.u32 1, %s1489_s10   ;;  %p1491_p5 = scmp.ne.s32.totalorder %s1490_s18, 0 }
 0x1da   : > { %s534_s27 = scalar_lea.sflag [#allocation4], %s533_s29 }
 0x1db   : > { %p716_p7 = pnand %p725_p9, %p1491_p5 }
 0x1dd   : > { %1010 = dma.done.wait (!%p716_p7), %s534_s27, 32  }
 0x1de   : > { %1012 = vsyncadd (!%p716_p7), %s534_s27, 4294967264  ;;  %s1492_s21 = sld [smem:[#allocation15_spill]]  ;;  %s1493_s7 = sld [smem:[#allocation19_spill]] }
 0x1e4   : > { %s542_s4 = sand.u32 1, %s1492_s21   ;;  %p1494_p10 = scmp.ne.s32.totalorder %s1493_s7, 0 }
 0x1e5   : > { %s543_s3 = scalar_lea.sflag [#allocation9], %s542_s4 }
 0x1e6   : > { %p719_p12 = pnand %p725_p9, %p1494_p10 }
 0x1e8   : > { %1014 = dma.done.wait (!%p719_p12), %s543_s3, 128  }
 0x1e9   : > { %1016 = vsyncadd (!%p719_p12), %s543_s3, 4294967168  ;;  %s25_s25 = sadd.s32 1, %s1059_s25   ;;  %s1495_s21 = sld [smem:[#allocation16_spill]] }
 0x1ea   : > { %p22_p11 = scmp.ge.s32.totalorder %s25_s25, 6   ;;  %s1496_s15 = smov %s1023_s16 }
 0x1eb   : > { %s1497_s16 = smov %s1027_s17  ;;  %s1498_s17 = smov %s1246_s1 }
 0x1ec   : > { %s1499_s18 = smov %s1035_s19  ;;  %s1500_s19 = smov %s1039_s20 }
 0x1ed   : > { %s1501_s20 = smov %s1249_s23  ;;  %s1502_s22 = smov %s1055_s24 }
 0x1ee   : > { %s1503_s23 = smov %s1506_s14  ;;  %s1504_s24 = smov %s1510_s26 }
 0x1ef   :  { %24 = sbr.rel (!%p22_p11) target bundleno = 16 (0x10), region = 110 }
 0x1f6   :  { %548 = vsyncpa [#allocation3], 1 }
 0x1f7   :  { %550 = vsyncpa [#allocation3 + $0x1], 1 }
 0x1f8   :  { %551 = vsyncpa [#allocation6], 1 }
 0x1f9   :  { %552 = vsyncpa [#allocation4], 1 }
 0x1fa   :  { %554 = vsyncpa [#allocation4 + $0x1], 1 }
 0x1fb   :  { %555 = vsyncpa [#allocation9], 1 }
 0x1fc   :  { %557 = vsyncpa [#allocation9 + $0x1], 1 }

</bundles_post_ra>
